<compile_context>
chip_gen: v5e
topology: v5e:2x2
jax: 0.10.0
libtpu: 0.0.40
codegen_flags: <defaults>
</compile_context>

<pallas_src>
import jax
import jax.numpy as jnp
from jax import lax
from jax.experimental import pallas as pl
from jax.experimental.pallas import tpu as pltpu


# ----------------------------------------------------------------------------
# Hardware-aware VMEM budgets.
# ----------------------------------------------------------------------------
def _physical_vmem_bytes(default=64 << 20):
    try:
        info = pltpu.get_tpu_info()
        cap = getattr(info, "vmem_capacity_bytes", None)
        if cap:
            return int(cap)
    except Exception:
        pass
    return default  # conservative fallback (works on 64-MiB v7x)


def _vmem_caps():
    phys = _physical_vmem_bytes()
    scoped_cap = min(int(phys * 3 // 4), 96 << 20)   # 48 MiB on v7x, 96 MiB on v5e/v6e
    tile_budget = min(int(phys * 0.45), 64 << 20)    # ~28 MiB on v7x, ~57 MiB on v5e/v6e
    return scoped_cap, tile_budget


# ----------------------------------------------------------------------------
# Kernel 1: standalone nearest-neighbour 2x upsample (use_conv=False path).
#
# Layout (N*C, H, W).  One MXU matmul per tile against a 0/1 matrix E of shape
# (W, 4W) with E[r, a*2W + j] = (j // 2 == r), so the output row
#   y[m, a*2W + j] = x[m, j // 2]     for a in {0, 1}
# already contains BOTH row phases packed along the lane axis.  The wrapper's
# reshape (nc, h, 4w) -> (nc, 2h, 2w) is a free contiguous merge, so there is
# no in-kernel interleave/relayout and no epilogue transpose.
# ----------------------------------------------------------------------------
def _upsample2x_kernel(x_ref, e_ref, o_ref):
    tb, th, w = x_ref.shape
    x2 = x_ref[...].reshape(tb * th, w)                       # free for th % 8 == 0
    # 0/1 expand matrix: one nonzero per column -> exact in the input dtype.
    y = jnp.dot(x2, e_ref[...], preferred_element_type=x2.dtype)   # (M, 4W)
    o_ref[...] = y.reshape(tb, th, 4 * w).astype(o_ref.dtype)


def _upsample_tiles(nc, h, w, itemsize, budget_bytes):
    # Per grid step (double-buffered in + out) ~ 10 * tb*th*w*itemsize, plus the
    # resident (w, 4w) expand matrix.
    avail = max(budget_bytes - 4 * w * w * itemsize, 8 * w * itemsize)
    max_m = max(1, avail // (10 * w * itemsize))
    th_cands = [d for d in range(1, h + 1) if h % d == 0 and (d % 8 == 0 or d == h)]
    tb_cands = [d for d in range(1, nc + 1) if nc % d == 0]
    best_tb, best_th, best_m = 1, th_cands[0], 0
    for th in th_cands:
        tb_opts = tb_cands if th % 8 == 0 else [1]   # keep the (tb*th, w) reshape free
        for tb in tb_opts:
            m = tb * th
            if m <= max_m and m > best_m:
                best_tb, best_th, best_m = tb, th, m
    return best_tb, best_th


def upsample_nearest_2x(x_nchw):
    n, c, h, w = x_nchw.shape
    if not jnp.issubdtype(x_nchw.dtype, jnp.floating):
        # TODO(synk): integer dtypes skip the MXU expand trick (no int matmul on v7x).
        return jnp.repeat(jnp.repeat(x_nchw, 2, axis=2), 2, axis=3)
    nc = n * c
    x3 = x_nchw.reshape(nc, h, w)                             # free reshape
    scoped_cap, tile_budget = _vmem_caps()
    tb, th = _upsample_tiles(nc, h, w, x3.dtype.itemsize, tile_budget)

    # Hoisted, VMEM-resident 0/1 expand matrix (W duplication + row-phase packing).
    cols = jnp.arange(4 * w)
    rows = jnp.arange(w)
    expand = ((cols[None, :] % (2 * w)) // 2 == rows[:, None]).astype(x3.dtype)

    out = pl.pallas_call(
        _upsample2x_kernel,
        out_shape=jax.ShapeDtypeStruct((nc, h, 4 * w), x3.dtype),
        grid=(nc // tb, h // th),
        in_specs=[pl.BlockSpec((tb, th, w), lambda bi, hi: (bi, hi, 0)),
                  pl.BlockSpec((w, 4 * w), lambda bi, hi: (0, 0))],
        out_specs=pl.BlockSpec((tb, th, 4 * w), lambda bi, hi: (bi, hi, 0)),
        compiler_params=pltpu.CompilerParams(
            dimension_semantics=("parallel", "parallel"),
            vmem_limit_bytes=scoped_cap),
    )(x3, expand)
    # (nc, h, [a*2w + j]) -> (n, c, 2h, 2w): both reshapes are contiguous/free.
    return out.reshape(n, c, 2 * h, 2 * w)


# ----------------------------------------------------------------------------
# Kernel 2: FUSED nearest-2x upsample + 3x3 "same" conv.
#
# The nearest upsample turns the 3x3 conv on the upsampled image into four
# phase-dependent 2x2 convs on the ORIGINAL image with folded weights:
#   out[2h+a, 2w+b, co] = bias[co]
#       + sum_{p,q in {0,1}} x_pad[h+a+p, w+b+q, :] @ Wf[a, b, p, q, :, co]
# The wrapper folds the q (column) tap into the contraction axis by building
# column-folded slabs  xcols[n, b, r, w, q*Cin+ci] = x_pad[n, r, w+b+q, ci]
# (on the 4x-smaller pre-upsample tensor, already in compute dtype), so the
# kernel only takes row-aligned slices and issues 8 matmuls of depth 2*Cin.
# The 4x upsampled tensor never exists in HBM or VMEM.
# ----------------------------------------------------------------------------
def _fused_up2x_conv3x3_kernel(xc_ref, wq_ref, b_ref, o_ref):
    # xc_ref: (2, H+2, W, 2*Cin)    column-folded padded slab (batch-resident)
    # wq_ref: (2, 2, 2, 2*Cin, Tco) folded weights [a, b, p, (q,ci), co]
    # b_ref : (1, Tco)              f32 bias
    # o_ref : (2, 2, K, W, Tco)     phase-major output row tile
    _, _, k, w, tco = o_ref.shape
    two_cin = xc_ref.shape[-1]
    row0 = pl.program_id(2) * k                 # row axis is always the last grid axis

    # Six row-aligned patch views (leading-dim offsets only, no sublane
    # misalignment; the reshape is free for W % 8 == 0 and the slab is already
    # in compute dtype, so no per-tile casts/copies).
    patches = {}
    for b in range(2):
        for s in range(3):
            patches[(b, s)] = xc_ref[b, pl.ds(row0 + s, k), :, :].reshape(k * w, two_cin)

    bias = jnp.broadcast_to(b_ref[...].astype(jnp.float32), (k * w, tco))  # hoisted once
    # Matmuls grouped per destination accumulator (a, b): contiguous same-target
    # dots let v7x's MXU result buffer accumulate in place.
    for a in range(2):
        for b in range(2):
            acc = bias
            for p in range(2):
                acc = acc + jnp.dot(patches[(b, a + p)], wq_ref[a, b, p],
                                    preferred_element_type=jnp.float32)
            o_ref[a, b] = acc.reshape(k, w, tco).astype(o_ref.dtype)


def _pad_cout(cout):
    # Lane-dense output (multiple of 128) when Cout is large; tiny Cout kept as-is.
    if cout >= 128 and cout % 128 != 0:
        return ((cout + 127) // 128) * 128
    return cout


def _cout_tile(cout_p):
    # TODO(synk): Cout < 128 emits a lane-sparse (masked vst) output tile; pad the
    # channel dim upstream if the extra HBM writes are acceptable.
    if cout_p <= 256:
        return cout_p
    if cout_p % 256 == 0:
        return 256
    return 128                                   # cout_p is a multiple of 128 here


def _conv_row_tile(h, w, tco, cin, out_itemsize, cd_itemsize, budget_bytes):
    best = 1
    for d in range(1, h + 1):
        if h % d:
            continue
        per = (2 * 4 * d * w * tco * out_itemsize      # output tile, double-buffered
               + 4 * d * w * tco * 4                   # four f32 accumulators
               + 3 * d * w * 2 * cin * cd_itemsize)    # live patch slack
        if d * w <= 8192 and per <= budget_bytes:
            best = d
    return best


def upsample2x_conv3x3(x_nchw, weight_oihw, bias, compute_dtype=jnp.bfloat16,
                       row_tile=None, cout_tile=None):
    n, cin, h, w = x_nchw.shape
    cout = weight_oihw.shape[0]
    cd = jnp.dtype(compute_dtype)
    out_dtype = x_nchw.dtype

    # --- weights: fold 3x3 taps into per-phase 2x2 taps, then fold the q tap
    # into the contraction axis -> (2, 2, 2, 2*Cin, Cout): 8 matmuls per tile.
    w_hwio = jnp.transpose(weight_oihw, (2, 3, 1, 0)).astype(jnp.float32)  # (3,3,Cin,Cout)
    sel = jnp.array([[[1., 0., 0.], [0., 1., 1.]],
                     [[1., 1., 0.], [0., 0., 1.]]], jnp.float32)           # [phase, tap, k]
    wf = jnp.einsum("apy,bqx,yxic->abpqic", sel, sel, w_hwio)              # (2,2,2,2,Cin,Cout)
    cout_p = _pad_cout(cout)
    if cout_p != cout:
        wf = jnp.pad(wf, ((0, 0),) * 5 + ((0, cout_p - cout),))
        bias_p = jnp.pad(bias.astype(jnp.float32), (0, cout_p - cout))
    else:
        bias_p = bias.astype(jnp.float32)
    wq = wf.reshape(2, 2, 2, 2 * cin, cout_p).astype(compute_dtype)        # (q,ci) merged q-major
    b2 = bias_p.reshape(1, cout_p)

    # --- input: pad + column-fold in the wrapper ON THE SMALL TENSOR, cast to
    # compute dtype ONCE (no per-tile casts or misaligned column slices in-kernel).
    xp = jnp.pad(jnp.transpose(x_nchw, (0, 2, 3, 1)).astype(compute_dtype),
                 ((0, 0), (1, 1), (1, 1), (0, 0)))                         # (N,H+2,W+2,Cin)
    xcols = jnp.stack(
        [jnp.concatenate([xp[:, :, b:b + w, :], xp[:, :, b + 1:b + 1 + w, :]], axis=-1)
         for b in range(2)], axis=1)                                       # (N,2,H+2,W,2Cin)

    tco = cout_tile if cout_tile is not None else _cout_tile(cout_p)
    scoped_cap, tile_budget = _vmem_caps()

    # Resident operands (double-buffered).  TODO(synk): pipeline_mode=pl.Buffered(1)
    # on the two resident in_specs would halve this on 64-MiB v7x.
    resident = (2 * 2 * (h + 2) * w * 2 * cin * cd.itemsize    # xcols slab
                + 2 * 16 * cin * tco * cd.itemsize             # folded weights
                + 2 * 2 * tco * 4)                             # bias
    k = row_tile if row_tile is not None else _conv_row_tile(
        h, w, tco, cin, out_dtype.itemsize, cd.itemsize,
        max(tile_budget - resident, 1 << 20))
    per_tile = (2 * 4 * k * w * tco * out_dtype.itemsize
                + 4 * k * w * tco * 4
                + 3 * k * w * 2 * cin * cd.itemsize)
    vmem_limit = int(min(scoped_cap, max(32 << 20, 1.25 * (resident + per_tile))))

    nj, ni = cout_p // tco, h // k
    slab_bytes = 2 * (h + 2) * w * 2 * cin * cd.itemsize
    weight_bytes = 16 * cin * tco * cd.itemsize
    batch_outer = slab_bytes >= weight_bytes    # keep the larger operand resident longest

    if batch_outer:
        grid = (n, nj, ni)
        x_map = lambda nb, j, i: (nb, 0, 0, 0, 0)
        w_map = lambda nb, j, i: (0, 0, 0, 0, j)
        b_map = lambda nb, j, i: (0, j)
        o_map = lambda nb, j, i: (nb, 0, 0, i, 0, j)
    else:
        grid = (nj, n, ni)
        x_map = lambda j, nb, i: (nb, 0, 0, 0, 0)
        w_map = lambda j, nb, i: (0, 0, 0, 0, j)
        b_map = lambda j, nb, i: (0, j)
        o_map = lambda j, nb, i: (nb, 0, 0, i, 0, j)

    out6 = pl.pallas_call(
        _fused_up2x_conv3x3_kernel,
        out_shape=jax.ShapeDtypeStruct((n, 2, 2, h, w, cout_p), out_dtype),
        grid=grid,
        in_specs=[
            # Column-folded slab: constant block index across the inner axes ->
            # VMEM-resident per batch, fetched once per outer change.
            pl.BlockSpec((None, 2, h + 2, w, 2 * cin), x_map),
            # Folded weights: resident per Cout tile.
            pl.BlockSpec((2, 2, 2, 2 * cin, tco), w_map),
            pl.BlockSpec((1, tco), b_map),
        ],
        out_specs=pl.BlockSpec((None, 2, 2, k, w, tco), o_map),
        compiler_params=pltpu.CompilerParams(
            dimension_semantics=("parallel", "parallel", "parallel"),
            vmem_limit_bytes=vmem_limit),
    )(xcols, wq, b2)

    # Phase-major -> NCHW in one pass (the reshape is free).
    # TODO(synk): on v5e this extra HBM pass can rival the kernel; emitting a
    # Cout-major layout with in-kernel XLU interleave (or keeping NHWC
    # downstream) would remove it.
    out = jnp.transpose(out6, (0, 5, 3, 1, 4, 2)).reshape(n, cout_p, 2 * h, 2 * w)
    if cout_p != cout:
        out = out[:, :cout]
    return out


# ----------------------------------------------------------------------------
# Module wrapper (mirrors the PyTorch Upsample2D forward).
# ----------------------------------------------------------------------------
class Upsample2D:
    def __init__(self, channels, use_conv=False, out_channels=None, name="conv",
                 key=None, compute_dtype=jnp.bfloat16):
        self.channels = channels
        self.out_channels = out_channels or channels
        self.use_conv = use_conv
        self.name = name
        self.compute_dtype = compute_dtype
        if use_conv:
            key = jax.random.PRNGKey(42) if key is None else key
            kw, kb = jax.random.split(key)
            fan_in = self.channels * 9
            bound = 1.0 / (fan_in ** 0.5)
            # Canonical params in PyTorch's OIHW layout, deterministic init.
            self.weight_oihw = jax.random.uniform(
                kw, (self.out_channels, self.channels, 3, 3), jnp.float32,
                -bound, bound)
            self.bias = jax.random.uniform(
                kb, (self.out_channels,), jnp.float32, -bound, bound)

    def __call__(self, hidden_states, output_size=None):
        n, c, h, w = hidden_states.shape
        assert c == self.channels
        if output_size is not None and tuple(output_size) != (2 * h, 2 * w):
            # TODO(synk): arbitrary output_size nearest resize (data-dependent
            # gather) is not implemented; only the scale_factor=2 path is.
            raise NotImplementedError("only 2x nearest upsampling implemented")
        if self.use_conv:
            # Fused path: the 2x-upsampled tensor is never materialized in HBM.
            return upsample2x_conv3x3(hidden_states, self.weight_oihw, self.bias,
                                      compute_dtype=self.compute_dtype)
        return upsample_nearest_2x(hidden_states)


# ----------------------------------------------------------------------------
# Pure-JAX reference (mirrors torch.nn.functional.interpolate + Conv2d).
# ----------------------------------------------------------------------------
def reference_forward(x, weight_oihw=None, bias=None, use_conv=False):
    up = jnp.repeat(jnp.repeat(x, 2, axis=2), 2, axis=3)
    if not use_conv:
        return up
    out = lax.conv_general_dilated(
        up, weight_oihw, window_strides=(1, 1), padding=((1, 1), (1, 1)),
        dimension_numbers=("NCHW", "OIHW", "NCHW"))
    return out + bias[None, :, None, None]


if __name__ == "__main__":
    key = jax.random.PRNGKey(0)
    kx, kp = jax.random.split(key)
    N, C, H, W = 2, 4, 16, 16
    x = jax.random.normal(kx, (N, C, H, W), jnp.float32)

    # Path 1: use_conv=False (pure nearest 2x upsample, exact).
    mod0 = Upsample2D(C, use_conv=False)
    y0 = jax.block_until_ready(mod0(x, None))
    assert y0.shape == (N, C, 2 * H, 2 * W)
    assert jnp.allclose(y0, reference_forward(x, use_conv=False)), "upsample mismatch"

    # Path 2: use_conv=True (fused upsample + 3x3 conv; bf16 MXU operands with
    # f32 accumulation -> compare with a correspondingly loose tolerance).
    COUT = 8
    mod1 = Upsample2D(C, use_conv=True, out_channels=COUT, key=kp)
    y1 = jax.block_until_ready(mod1(x, None))
    ref1 = reference_forward(x, mod1.weight_oihw, mod1.bias, use_conv=True)
    assert y1.shape == (N, COUT, 2 * H, 2 * W)
    err1 = float(jnp.max(jnp.abs(y1 - ref1)))
    assert jnp.allclose(y1, ref1, atol=2e-2, rtol=2e-2), err1

    # Path 3: fused conv with f32 compute dtype and forced multiple row tiles
    # (exercises the row-tiled BlockSpec + dynamic row offset + configurable
    # compute dtype).  Tolerance stays loose since the TPU default matmul
    # precision may still truncate f32 operands.
    y2 = jax.block_until_ready(
        upsample2x_conv3x3(x, mod1.weight_oihw, mod1.bias,
                           compute_dtype=jnp.float32, row_tile=4))
    err2 = float(jnp.max(jnp.abs(y2 - ref1)))
    assert jnp.allclose(y2, ref1, atol=2e-2, rtol=2e-2), err2

    print("KERNEL_OK")
</pallas_src>

<mosaic_0001>
module attributes {stable_mosaic.version = 11 : i64} {
  func.func @_upsample2x_kernel(%arg0: i32, %arg1: i32, %arg2: memref<8x16x16xf32, #tpu.memory_space<vmem>>, %arg3: memref<16x64xf32, #tpu.memory_space<vmem>>, %arg4: memref<8x16x64xf32, #tpu.memory_space<vmem>>) attributes {dimension_semantics = [#tpu.dimension_semantics<parallel>, #tpu.dimension_semantics<parallel>], iteration_bounds = array<i64: 1, 1>, scalar_prefetch = 0 : i64, scratch_operands = 0 : i64, tpu.core_type = #tpu.core_type<tc>, window_params = [{transform_indices = @transform_0, window_bounds = array<i64: 8, 16, 16>}, {pipeline_mode = #tpu.pipeline_mode<synchronous>, transform_indices = @transform_1, window_bounds = array<i64: 16, 64>}, {transform_indices = @transform_2, window_bounds = array<i64: 8, 16, 64>}]} {
    %c0 = arith.constant 0 : index
    %c0_0 = arith.constant 0 : index
    %c0_1 = arith.constant 0 : index
    %0 = vector.load %arg2[%c0, %c0_0, %c0_1] : memref<8x16x16xf32, #tpu.memory_space<vmem>>, vector<8x16x16xf32>
    %1 = vector.shape_cast %0 : vector<8x16x16xf32> to vector<128x16xf32>
    %c0_2 = arith.constant 0 : index
    %c0_3 = arith.constant 0 : index
    %2 = vector.load %arg3[%c0_2, %c0_3] : memref<16x64xf32, #tpu.memory_space<vmem>>, vector<16x64xf32>
    %cst = arith.constant dense<0.000000e+00> : vector<128x64xf32>
    %3 = tpu.matmul %1, %2, %cst {dimension_numbers = #tpu.dot_dimension_numbers<[1], [0], [0], [1], [0, 0, 1, 1], [], []>} : vector<128x16xf32>, vector<16x64xf32>, vector<128x64xf32> -> vector<128x64xf32>
    %4 = vector.shape_cast %3 : vector<128x64xf32> to vector<8x16x64xf32>
    %c0_4 = arith.constant 0 : index
    %c0_5 = arith.constant 0 : index
    %c0_6 = arith.constant 0 : index
    %5 = vector.load %arg4[%c0_4, %c0_5, %c0_6] : memref<8x16x64xf32, #tpu.memory_space<vmem>>, vector<8x16x64xf32>
    tpu.vector_store %arg4[%c0_4, %c0_5, %c0_6], %4 {strides = array<i32>} : memref<8x16x64xf32, #tpu.memory_space<vmem>>, vector<8x16x64xf32>,
    return
  }
  func.func @transform_0(%arg0: i32, %arg1: i32) -> (i32, i32, i32) {
    %c0_i32 = arith.constant 0 : i32
    %c0_i32_0 = arith.constant 0 : i32
    return %arg0, %arg1, %c0_i32 : i32, i32, i32
  }
  func.func @transform_1(%arg0: i32, %arg1: i32) -> (i32, i32) {
    %c0_i32 = arith.constant 0 : i32
    %c0_i32_0 = arith.constant 0 : i32
    %c0_i32_1 = arith.constant 0 : i32
    return %c0_i32, %c0_i32_0 : i32, i32
  }
  func.func @transform_2(%arg0: i32, %arg1: i32) -> (i32, i32, i32) {
    %c0_i32 = arith.constant 0 : i32
    %c0_i32_0 = arith.constant 0 : i32
    return %arg0, %arg1, %c0_i32 : i32, i32, i32
  }
}

</mosaic_0001>

<bundles_post_ra>
// kernel: tpu_custom_call.1
= control target key start
LH: loop header
LB: loop body
LE: loop exit
PB: predicated region body
PF: predicated region fallthrough
CT: control target
= control target key end

     0   :  { %7 = vsyncpa [#allocation3], 0  ;;  %s388_s0 = inlined_call_operand.hbm [shape: f32[8,16,16], index: 0, kind: input, shape index: {}]   ;;  %s389_s1 = inlined_call_operand.hbm [shape: f32[16,64], index: 1, kind: input, shape index: {}]   ;;  %s390_s2 = inlined_call_operand.hbm [shape: f32[8,16,64], index: 2, kind: output, shape index: {}]  }
   0x1   :  { %8 = vsyncpa [#allocation6], 0 }
   0x2   :  { %9 = vsyncpa [#allocation4], 0  ;;  %s14_s11 = sshll.u32 %s388_s0, 4  ;;  %s318_s12 = smov [#allocation2]   ;;  %s15_s11 = int_to_ptr.hbm [resolvable:$true] %s14_s11 }
   0x3   :  { %s16_s13 = sshll.u32 %s318_s12, 4  ;;  %s27_s16 = sshll.u32 %s389_s1, 4  ;;  %s17_s13 = int_to_ptr.vmem [resolvable:$true] %s16_s13  ;;  %s28_s16 = int_to_ptr.hbm [resolvable:$true] %s27_s16 }
   0x4   :  { %s319_s17 = smov 128   ;;  %s320_s18 = smov 8  }
   0x5   :  { %22 = dma.hbm_to_vmem [thread:$0]  %s15_s11, 2048, %s17_s13, [#allocation3], %s319_s17, %s319_s17, %s320_s18  }
   0x6   :  { %s321_s19 = smov [#allocation5]  }
   0x7   :  { %s29_s20 = sshll.u32 %s321_s19, 4  ;;  %s30_s20 = int_to_ptr.vmem [resolvable:$true] %s29_s20 }
   0x8   :  { %35 = dma.hbm_to_vmem [thread:$0]  %s28_s16, 256, %s30_s20, [#allocation6], %s319_s17, %s319_s17, %s320_s18  }
   0x9   :  { %312 = dma.done.wait [#allocation3], 2048  }
   0xa   :  { %313 = vsyncadd [#allocation3], 4294965248 }
   0xb   :  { %314 = dma.done.wait [#allocation6], 256  }
   0xc   :  { %315 = vsyncadd [#allocation6], 4294967040  ;;  %v61_v0 = vld [vmem:[#allocation5 + $0x8] sm:$0xff]  ;;  %v60_v1 = vld [vmem:[#allocation5] sm:$0xff]  ;;  %vm62_vm0 = vcmask 130048   ;;  %vm176_vm1 = vcmask 523264  }
   0xd   :  { %230 = vmatpush.msra.mxu2 %v61_v0  ;;  %231 = vmatpush.msra.mxu3 %v61_v0  ;;  %v52_v2 = vld [vmem:[#allocation2 + $0x40] sm:$0xff]  ;;  %v53_v6 = vld [vmem:[#allocation2 + $0x48] sm:$0xff]  ;;  %v54_v10 = vld [vmem:[#allocation2 + $0x50] sm:$0xff]  ;;  %s322_s0 = smov [#allocation7]   ;;  %s199_s23 = sshll.u32 %s390_s2, 4  ;;  %s200_s23 = int_to_ptr.hbm [resolvable:$true] %s199_s23 }
   0xe   :  { %v56_v3 = vld [vmem:[#allocation2 + $0x60] sm:$0xff]  ;;  %125 = vmatpush.msra.mxu0 %v61_v0  ;;  %229 = vmatpush.msra.mxu1 %v61_v0  ;;  %v57_v7 = vld [vmem:[#allocation2 + $0x68] sm:$0xff]  ;;  %v58_v11 = vld [vmem:[#allocation2 + $0x70] sm:$0xff]  ;;  %s197_s1 = sshll.u32 %s322_s0, 4  ;;  %s198_s1 = int_to_ptr.vmem [resolvable:$true] %s197_s1 }
   0xf   :  { %233 = vmatpush.msra.mxu2 %v60_v1  ;;  %234 = vmatpush.msra.mxu3 %v60_v1  ;;  %v44_v4 = vld [vmem:[#allocation2] sm:$0xff]  ;;  %v45_v8 = vld [vmem:[#allocation2 + $0x8] sm:$0xff]  ;;  %v46_v12 = vld [vmem:[#allocation2 + $0x10] sm:$0xff] }
  0x10   :  { %v48_v5 = vld [vmem:[#allocation2 + $0x20] sm:$0xff]  ;;  %221 = vmatmul.msk.f32.vlgmr.msra.gmra.mxu2 %vm62_vm0, %v52_v2  ;;  %225 = vmatmul.msk.f32.vlgmr.msra.gmra.mxu3 %vm62_vm0, %v56_v3  ;;  %v49_v9 = vld [vmem:[#allocation2 + $0x28] sm:$0xff]  ;;  %v50_v13 = vld [vmem:[#allocation2 + $0x30] sm:$0xff] }
  0x11   :  { %126 = vmatpush.msra.mxu0 %v60_v1  ;;  %232 = vmatpush.msra.mxu1 %v60_v1  ;;  %v55_v14 = vld [vmem:[#allocation2 + $0x58] sm:$0xff] }
  0x12   :  { %213 = vmatmul.msk.f32.vlgmr.msra.gmra.mxu0 %vm62_vm0, %v44_v4  ;;  %217 = vmatmul.msk.f32.vlgmr.msra.gmra.mxu1 %vm62_vm0, %v48_v5  ;;  %v59_v15 = vld [vmem:[#allocation2 + $0x78] sm:$0xff] }
  0x13   :  { %v47_v16 = vld [vmem:[#allocation2 + $0x18] sm:$0xff] }
  0x14   :  { %v51_v17 = vld [vmem:[#allocation2 + $0x38] sm:$0xff] }
  0x18   :  { %222 = vmatmul.msk.f32.gmra.mxu2 %vm62_vm0, %v53_v6  ;;  %226 = vmatmul.msk.f32.gmra.mxu3 %vm62_vm0, %v57_v7 }
  0x1a   :  { %214 = vmatmul.msk.f32.gmra.mxu0 %vm62_vm0, %v45_v8  ;;  %218 = vmatmul.msk.f32.gmra.mxu1 %vm62_vm0, %v49_v9 }
  0x20   :  { %223 = vmatmul.msk.f32.gmra.mxu2 %vm62_vm0, %v54_v10  ;;  %227 = vmatmul.msk.f32.gmra.mxu3 %vm62_vm0, %v58_v11 }
  0x22   :  { %215 = vmatmul.msk.f32.gmra.mxu0 %vm62_vm0, %v46_v12  ;;  %219 = vmatmul.msk.f32.gmra.mxu1 %vm62_vm0, %v50_v13 }
  0x28   :  { %224 = vmatmul.msk.f32.gmra.mxu2 %vm62_vm0, %v55_v14  ;;  %228 = vmatmul.msk.f32.gmra.mxu3 %vm62_vm0, %v59_v15 }
  0x2a   :  { %216 = vmatmul.msk.f32.gmra.mxu0 %vm62_vm0, %v47_v16  ;;  %220 = vmatmul.msk.f32.gmra.mxu1 %vm62_vm0, %v51_v17 }
  0x8f   :  { %v128_v18 = vpop.f32.mrf.mxu0  ;;  %v140_v19 = vpop.f32.mrf.mxu1 }
  0x90   :  { %177 = vst.msk [vmem:[#allocation7] sm:$0xff] %vm176_vm1, %v128_v18 }
  0x91   :  { %181 = vst.msk [vmem:[#allocation7 + $0x20] sm:$0xff] %vm176_vm1, %v140_v19 }
  0x93   :  { %v152_v20 = vpop.f32.mrf.mxu2  ;;  %v164_v21 = vpop.f32.mrf.mxu3 }
  0x94   :  { %185 = vst.msk [vmem:[#allocation7 + $0x40] sm:$0xff] %vm176_vm1, %v152_v20 }
  0x95   :  { %189 = vst.msk [vmem:[#allocation7 + $0x60] sm:$0xff] %vm176_vm1, %v164_v21 }
  0x97   :  { %v131_v22 = vpop.f32.mrf.mxu0  ;;  %v143_v23 = vpop.f32.mrf.mxu1 }
  0x98   :  { %178 = vst.msk [vmem:[#allocation7 + $0x8] sm:$0xff] %vm176_vm1, %v131_v22 }
  0x99   :  { %182 = vst.msk [vmem:[#allocation7 + $0x28] sm:$0xff] %vm176_vm1, %v143_v23 }
  0x9b   :  { %v155_v24 = vpop.f32.mrf.mxu2  ;;  %v167_v25 = vpop.f32.mrf.mxu3 }
  0x9c   :  { %186 = vst.msk [vmem:[#allocation7 + $0x48] sm:$0xff] %vm176_vm1, %v155_v24 }
  0x9d   :  { %190 = vst.msk [vmem:[#allocation7 + $0x68] sm:$0xff] %vm176_vm1, %v167_v25 }
  0x9f   :  { %v134_v26 = vpop.f32.mrf.mxu0  ;;  %v146_v27 = vpop.f32.mrf.mxu1 }
  0xa0   :  { %179 = vst.msk [vmem:[#allocation7 + $0x10] sm:$0xff] %vm176_vm1, %v134_v26 }
  0xa1   :  { %183 = vst.msk [vmem:[#allocation7 + $0x30] sm:$0xff] %vm176_vm1, %v146_v27 }
  0xa3   :  { %v158_v28 = vpop.f32.mrf.mxu2  ;;  %v170_v29 = vpop.f32.mrf.mxu3 }
  0xa4   :  { %187 = vst.msk [vmem:[#allocation7 + $0x50] sm:$0xff] %vm176_vm1, %v158_v28 }
  0xa5   :  { %191 = vst.msk [vmem:[#allocation7 + $0x70] sm:$0xff] %vm176_vm1, %v170_v29 }
  0xa7   :  { %v137_v30 = vpop.f32.mrf.mxu0  ;;  %v149_v31 = vpop.f32.mrf.mxu1 }
  0xa8   :  { %180 = vst.msk [vmem:[#allocation7 + $0x18] sm:$0xff] %vm176_vm1, %v137_v30 }
  0xa9   :  { %184 = vst.msk [vmem:[#allocation7 + $0x38] sm:$0xff] %vm176_vm1, %v149_v31 }
  0xab   :  { %v161_v32 = vpop.f32.mrf.mxu2  ;;  %v173_v33 = vpop.f32.mrf.mxu3 }
  0xac   :  { %188 = vst.msk [vmem:[#allocation7 + $0x58] sm:$0xff] %vm176_vm1, %v161_v32 }
  0xad   :  { %192 = vst.msk [vmem:[#allocation7 + $0x78] sm:$0xff] %vm176_vm1, %v173_v33 }
  0xae   :  { %205 = dma.vmem_to_hbm [thread:$0]  %s198_s1, 2048, %s200_s23, [#allocation4], %s319_s17, %s319_s17, %s320_s18  }
  0xaf   :  { %316 = dma.done.wait [#allocation4], 2048  }
  0xb0   :  { %317 = vsyncadd [#allocation4], 4294965248 }
  0xb1   :  { %210 = vsyncpa [#allocation3], 1 }
  0xb2   :  { %211 = vsyncpa [#allocation6], 1 }
  0xb3   :  { %212 = vsyncpa [#allocation4], 1 }

</bundles_post_ra>
